<compile_context>
chip_gen: v7x
topology: tpu7x:2x2x1
jax: 0.10.0
libtpu: 0.0.40
codegen_flags: <defaults>
</compile_context>

<pallas_src>
import functools

import jax
import jax.numpy as jnp
from jax import lax
from jax.experimental import pallas as pl
from jax.experimental.pallas import tpu as pltpu

LANE = 128


def _pinball_sum(y_true, y_pred, q):
    """Plain-JAX pinball *sum* (ragged tail / tiny-input fallback)."""
    err = y_true.astype(jnp.float32) - y_pred.astype(jnp.float32)
    return jnp.sum(q * err - jnp.minimum(err, 0.0))


def _quantile_loss_kernel(yt_ref, yp_ref, out_ref, *, q):
    i = pl.program_id(1)  # reduction ("arbitrary") axis

    @pl.when(i == 0)
    def _():
        out_ref[...] = jnp.zeros_like(out_ref)

    err = yt_ref[...].astype(jnp.float32) - yp_ref[...].astype(jnp.float32)
    # Pinball loss: max((q-1)*e, q*e) == q*e - min(e, 0)  (one fewer multiply).
    loss = q * err - jnp.minimum(err, 0.0)

    tr, lane = loss.shape
    acc_rows = out_ref.shape[0]
    # Fold the (tr, 128) tile into the resident (acc_rows, 128) accumulator
    # with pure element-wise VPU adds (no cross-lane XLU work in the hot loop).
    # acc_rows = 64 gives 8 independent vreg accumulation chains, keeping the
    # dependent-add latency hidden under the per-step DMA even at 4-8 MiB tiles.
    partial = jnp.sum(loss.reshape(tr // acc_rows, acc_rows, lane), axis=0)
    out_ref[...] += partial


def _chip_defaults():
    """(tile_rows, num_parallel) defaults per TPU generation."""
    try:
        kind = jax.devices()[0].device_kind.lower()
    except Exception:
        kind = ""
    if "v5 lite" in kind or "v5e" in kind or "v5lite" in kind:
        return 4096, 1          # 8 MiB of input double-buffers (16 MiB scoped VMEM)
    if "v6" in kind:
        return 8192, 1          # 16 MiB of input double-buffers
    if "7" in kind:             # v7x: 2 TensorCores, ~3.2 TB/s HBM per TC
        return 8192, 2
    return 2048, 1              # conservative default (v4 / unknown / interpret)


def quantile_loss(y_true, y_pred, q: float = 0.25, tile_rows=None, num_parallel=None):
    """Mean pinball loss over all elements of y_true / y_pred."""
    assert y_true.shape == y_pred.shape, "y_true / y_pred shape mismatch"
    n = int(y_true.size)
    if n == 0:
        return jnp.float32(jnp.nan)

    tr_default, npar_default = _chip_defaults()
    tr_target = tr_default if tile_rows is None else int(tile_rows)
    npar_req = npar_default if num_parallel is None else int(num_parallel)

    rows_full = n // LANE

    # --- Tile-row selection -------------------------------------------------
    # Target tiles are multiples of 64 rows (8 accumulator vregs); tiny inputs
    # shrink to a multiple of 32 / 16 / 8 rows instead of padding.
    tr = max(64, (tr_target // 64) * 64)
    if rows_full < tr:
        if rows_full >= 64:
            tr = (rows_full // 64) * 64
        elif rows_full >= 32:
            tr = (rows_full // 32) * 32
        elif rows_full >= 8:
            tr = (rows_full // 8) * 8
        else:
            tr = 0  # not even one (8, 128) tile -> pure-JAX fallback

    yt_flat = y_true.reshape(-1)
    yp_flat = y_pred.reshape(-1)

    if tr == 0:
        return _pinball_sum(yt_flat, yp_flat, q) / n

    # Sub-32-bit dtypes need blocks matching packed sublane tiling (16/32 rows);
    # only the tiny-input clamp path can yield tr % 32 != 0 -> upcast there.
    if tr % 32 != 0 and (yt_flat.dtype.itemsize < 4 or yp_flat.dtype.itemsize < 4):
        yt_flat = yt_flat.astype(jnp.float32)
        yp_flat = yp_flat.astype(jnp.float32)

    tiles_total = rows_full // tr
    # Megacore split (v7x): only if each core gets at least 2 reduction steps.
    n_par = npar_req if (npar_req > 1 and tiles_total >= 2 * npar_req) else 1
    steps = tiles_total // n_par
    kernel_rows = n_par * steps * tr
    kernel_elems = kernel_rows * LANE

    # Accumulator block height: largest of {64, 32, 16, 8} dividing tr.
    acc_rows = next(a for a in (64, 32, 16, 8) if tr % a == 0)

    # --- Lane-dense 2-D views, with NO full-array pad/copy --------------------
    # A reshape of the contiguous flat array is free; the kernel reads only the
    # first kernel_rows rows and the small ragged tail is reduced in JAX below.
    if kernel_elems == n:
        yt2d = yt_flat.reshape(kernel_rows, LANE)
        yp2d = yp_flat.reshape(kernel_rows, LANE)
    elif n % LANE == 0:
        yt2d = yt_flat.reshape(rows_full, LANE)   # kernel reads a row prefix
        yp2d = yp_flat.reshape(rows_full, LANE)
    else:
        # Rare unaligned case: zero-offset prefix slice of the aligned portion.
        yt2d = lax.slice(yt_flat, (0,), (kernel_elems,)).reshape(kernel_rows, LANE)
        yp2d = lax.slice(yp_flat, (0,), (kernel_elems,)).reshape(kernel_rows, LANE)

    itemsize = max(yt2d.dtype.itemsize, yp2d.dtype.itemsize)
    # 2 inputs x 2 pipeline buffers x block + resident output blocks + headroom.
    vmem_limit = (2 * 2 * tr * LANE * itemsize
                  + 2 * acc_rows * LANE * 4
                  + (8 << 20))
    vmem_limit = int(min(max(vmem_limit, 16 << 20), 32 << 20))

    cost = pl.CostEstimate(
        flops=5 * kernel_elems,
        transcendentals=0,
        bytes_accessed=2 * kernel_elems * itemsize + n_par * acc_rows * LANE * 4,
    )

    partials = pl.pallas_call(
        functools.partial(_quantile_loss_kernel, q=float(q)),
        out_shape=jax.ShapeDtypeStruct((n_par * acc_rows, LANE), jnp.float32),
        grid_spec=pltpu.PrefetchScalarGridSpec(
            num_scalar_prefetch=0,
            grid=(n_par, steps),
            in_specs=[
                pl.BlockSpec((tr, LANE), lambda c, i: (c * steps + i, 0)),
                pl.BlockSpec((tr, LANE), lambda c, i: (c * steps + i, 0)),
            ],
            out_specs=pl.BlockSpec((acc_rows, LANE), lambda c, i: (c, 0)),
        ),
        compiler_params=pltpu.CompilerParams(
            dimension_semantics=("parallel", "arbitrary"),
            vmem_limit_bytes=vmem_limit,
        ),
        cost_estimate=cost,
    )(yt2d, yp2d)

    total = jnp.sum(partials)
    if kernel_elems < n:
        total = total + _pinball_sum(yt_flat[kernel_elems:], yp_flat[kernel_elems:], q)
    return total / n


def quantile_loss_ref(y_true, y_pred, q: float = 0.25):
    err = y_true.astype(jnp.float32) - y_pred.astype(jnp.float32)
    return jnp.mean(jnp.maximum((q - 1.0) * err, q * err))


if __name__ == "__main__":
    key = jax.random.PRNGKey(0)
    k1, k2 = jax.random.split(key)

    # Small NCHW-like inputs (any shape works; the kernel sees a flat slab).
    shape = (2, 4, 16, 16)
    y_true = jax.random.normal(k1, shape, dtype=jnp.float32)
    y_pred = jax.random.normal(k2, shape, dtype=jnp.float32)

    q = 0.25
    out = jax.block_until_ready(quantile_loss(y_true, y_pred, q=q))

    ref = quantile_loss_ref(y_true, y_pred, q=q)
    assert jnp.allclose(out, ref, rtol=1e-5, atol=1e-6), (out, ref)

    print("KERNEL_OK")
</pallas_src>

<mosaic_0001>
module attributes {stable_mosaic.version = 11 : i64} {
  func.func @_quantile_loss_kernel(%arg0: i32, %arg1: i32, %arg2: memref<16x128xf32, #tpu.memory_space<vmem>>, %arg3: memref<16x128xf32, #tpu.memory_space<vmem>>, %arg4: memref<16x128xf32, #tpu.memory_space<vmem>>) attributes {dimension_semantics = [#tpu.dimension_semantics<parallel>, #tpu.dimension_semantics<arbitrary>], iteration_bounds = array<i64: 1, 1>, scalar_prefetch = 0 : i64, scratch_operands = 0 : i64, tpu.core_type = #tpu.core_type<tc>, window_params = [{transform_indices = @transform_0, window_bounds = array<i64: 16, 128>}, {transform_indices = @transform_1, window_bounds = array<i64: 16, 128>}, {transform_indices = @transform_2, window_bounds = array<i64: 16, 128>}]} {
    %c0_i32 = arith.constant 0 : i32
    %0 = arith.cmpi eq, %arg1, %c0_i32 : i32
    %1 = arith.extui %0 : i1 to i32
    %c0_i32_0 = arith.constant 0 : i32
    %2 = arith.cmpi ne, %1, %c0_i32_0 : i32
    scf.if %2 {
      %cst_10 = arith.constant 0.000000e+00 : f32
      %16 = vector.broadcast %cst_10 : f32 to vector<16x128xf32>
      %c0_11 = arith.constant 0 : index
      %c0_12 = arith.constant 0 : index
      %17 = vector.load %arg4[%c0_11, %c0_12] : memref<16x128xf32, #tpu.memory_space<vmem>>, vector<16x128xf32>
      tpu.vector_store %arg4[%c0_11, %c0_12], %16 {strides = array<i32>} : memref<16x128xf32, #tpu.memory_space<vmem>>, vector<16x128xf32>,
    } else {
    }
    %c0 = arith.constant 0 : index
    %c0_1 = arith.constant 0 : index
    %3 = vector.load %arg2[%c0, %c0_1] : memref<16x128xf32, #tpu.memory_space<vmem>>, vector<16x128xf32>
    %c0_2 = arith.constant 0 : index
    %c0_3 = arith.constant 0 : index
    %4 = vector.load %arg3[%c0_2, %c0_3] : memref<16x128xf32, #tpu.memory_space<vmem>>, vector<16x128xf32>
    %5 = arith.subf %3, %4 : vector<16x128xf32>
    %cst = arith.constant 2.500000e-01 : f32
    %6 = vector.broadcast %cst : f32 to vector<16x128xf32>
    %7 = arith.mulf %6, %5 : vector<16x128xf32>
    %cst_4 = arith.constant 0.000000e+00 : f32
    %8 = vector.broadcast %cst_4 : f32 to vector<16x128xf32>
    %9 = arith.minimumf %5, %8 : vector<16x128xf32>
    %10 = arith.subf %7, %9 : vector<16x128xf32>
    %11 = vector.shape_cast %10 : vector<16x128xf32> to vector<1x16x128xf32>
    %cst_5 = arith.constant dense<0.000000e+00> : vector<16x128xf32>
    %12 = vector.multi_reduction <add>, %11, %cst_5 [0] : vector<1x16x128xf32> to vector<16x128xf32>
    %c0_6 = arith.constant 0 : index
    %c0_7 = arith.constant 0 : index
    %13 = vector.load %arg4[%c0_6, %c0_7] : memref<16x128xf32, #tpu.memory_space<vmem>>, vector<16x128xf32>
    %14 = arith.addf %13, %12 : vector<16x128xf32>
    %c0_8 = arith.constant 0 : index
    %c0_9 = arith.constant 0 : index
    %15 = vector.load %arg4[%c0_8, %c0_9] : memref<16x128xf32, #tpu.memory_space<vmem>>, vector<16x128xf32>
    tpu.vector_store %arg4[%c0_8, %c0_9], %14 {strides = array<i32>} : memref<16x128xf32, #tpu.memory_space<vmem>>, vector<16x128xf32>,
    return
  }
  func.func @transform_0(%arg0: i32, %arg1: i32) -> (i32, i32) {
    %c1_i32 = arith.constant 1 : i32
    %0 = arith.muli %arg0, %c1_i32 : i32
    %1 = arith.addi %0, %arg1 : i32
    %c0_i32 = arith.constant 0 : i32
    %c0_i32_0 = arith.constant 0 : i32
    return %1, %c0_i32 : i32, i32
  }
  func.func @transform_1(%arg0: i32, %arg1: i32) -> (i32, i32) {
    %c1_i32 = arith.constant 1 : i32
    %0 = arith.muli %arg0, %c1_i32 : i32
    %1 = arith.addi %0, %arg1 : i32
    %c0_i32 = arith.constant 0 : i32
    %c0_i32_0 = arith.constant 0 : i32
    return %1, %c0_i32 : i32, i32
  }
  func.func @transform_2(%arg0: i32, %arg1: i32) -> (i32, i32) {
    %c0_i32 = arith.constant 0 : i32
    %c0_i32_0 = arith.constant 0 : i32
    return %arg0, %c0_i32 : i32, i32
  }
}

</mosaic_0001>

<bundles_post_ra>
// kernel: tpu_custom_call.1
= control target key start
LH: loop header
LB: loop body
LE: loop exit
PB: predicated region body
PF: predicated region fallthrough
CT: control target
= control target key end

     0   :  { %7 = vsyncpa [#allocation3], 0  ;;  %s239_s0 = inlined_call_operand.hbm [shape: f32[16,128], index: 0, kind: input, shape index: {}]   ;;  %s240_s1 = inlined_call_operand.hbm [shape: f32[16,128], index: 1, kind: input, shape index: {}]   ;;  %s241_s2 = inlined_call_operand.hbm [shape: f32[16,128], index: 2, kind: output, shape index: {}]  }
   0x1   :  { %8 = vsyncpa [#allocation6], 0 }
   0x2   :  { %9 = vsyncpa [#allocation4], 0  ;;  %s174_s9 = smov [#allocation2]   ;;  %s102_s13 = scalar_lea.hbm %s239_s0, 256 }
   0x3   :  { %s19_s10 = sshll.u32 %s174_s9, 4  ;;  %p103_p0 = scmp.ne.s32.totalorder %s239_s0, %s102_s13  ;;  %s20_s10 = int_to_ptr.vmem [resolvable:$true] %s19_s10 }
   0x4   :  { %p106_p1 = scmp.lt.u32.totalorder %s102_s13, %s239_s0 }
   0x6   :  { %p108_p2 = pnand %p106_p1, %p103_p0 }
   0x8   :  { %111 = shalt.err (!%p108_p2)
}
   0x9   :  { %s112_s18 = scalar_lea.vmem %s20_s10, 256  ;;  %p117_p4 = scmp.lt.s32.totalorder %s20_s10, %s20_s10 }
   0xa   :  { %p113_p3 = scmp.ne.s32.totalorder %s20_s10, %s112_s18  ;;  %p118_p5 = scmp.lt.s32.totalorder %s112_s18, %s112_s18 }
   0xc   :  { %p119_p6 = por %p118_p5, %p117_p4 }
   0xe   :  { %p120_p7 = pnand %p119_p6, %p113_p3 }
  0x10   :  { %123 = shalt.err (!%p120_p7)
}
  0x11   :  { %s175_s19 = smov 128   ;;  %s176_s20 = smov 8  }
  0x12   :  { %25 = dma.hbm_to_vmem [thread:$0]  %s239_s0, 256, %s20_s10, [#allocation3], %s175_s19, %s175_s19, %s176_s20  }
  0x13   :  { %s177_s23 = smov [#allocation5]   ;;  %s124_s27 = scalar_lea.hbm %s240_s1, 256 }
  0x14   :  { %s35_s24 = sshll.u32 %s177_s23, 4  ;;  %p125_p8 = scmp.ne.s32.totalorder %s240_s1, %s124_s27  ;;  %s36_s24 = int_to_ptr.vmem [resolvable:$true] %s35_s24 }
  0x15   :  { %p128_p9 = scmp.lt.u32.totalorder %s124_s27, %s240_s1 }
  0x17   :  { %p130_p10 = pnand %p128_p9, %p125_p8 }
  0x19   :  { %133 = shalt.err (!%p130_p10)
}
  0x1a   :  { %s134_s4 = scalar_lea.vmem %s36_s24, 256  ;;  %p139_p12 = scmp.lt.s32.totalorder %s36_s24, %s36_s24 }
  0x1b   :  { %p135_p11 = scmp.ne.s32.totalorder %s36_s24, %s134_s4  ;;  %p140_p13 = scmp.lt.s32.totalorder %s134_s4, %s134_s4 }
  0x1d   :  { %p141_p0 = por %p140_p13, %p139_p12 }
  0x1f   :  { %p142_p1 = pnand %p141_p0, %p135_p11 }
  0x21   :  { %145 = shalt.err (!%p142_p1)
}
  0x22   :  { %41 = dma.hbm_to_vmem [thread:$0]  %s240_s1, 256, %s36_s24, [#allocation6], %s175_s19, %s175_s19, %s176_s20  }
  0x23   :  { %168 = dma.done.wait [#allocation3], 256  }
  0x24   :  { %169 = vsyncadd [#allocation3], 4294967040 }
  0x25   :  { %170 = dma.done.wait [#allocation6], 256  }
  0x26   :  { %171 = vsyncadd [#allocation6], 4294967040  ;;  %v58_v0 = vld [vmem:[#allocation2] sm:$0xff]  ;;  %v60_v1 = vld [vmem:[#allocation5] sm:$0xff]  ;;  %s178_s6 = smov [#allocation7]  }
  0x27   :  { %v59_v2 = vld [vmem:[#allocation2 + $0x8] sm:$0xff]  ;;  %v62_v3 = vsub.f32 %v58_v0, %v60_v1  ;;  %v61_v4 = vld [vmem:[#allocation5 + $0x8] sm:$0xff]  ;;  %s83_s7 = sshll.u32 %s178_s6, 4  ;;  %s84_s7 = int_to_ptr.vmem [resolvable:$true] %s83_s7 }
  0x28   :  { %v63_v5 = vsub.f32 %v59_v2, %v61_v4  ;;  %s146_s1 = scalar_lea.vmem %s84_s7, 256  ;;  %p151_p3 = scmp.lt.s32.totalorder %s84_s7, %s84_s7 }
  0x29   :  { %v64_v6 = vmul.f32 0.25, %v62_v3  ;;  %v66_v7 = vmin.f32 %v62_v3, 0.0  ;;  %p147_p2 = scmp.ne.s32.totalorder %s84_s7, %s146_s1  ;;  %p152_p4 = scmp.lt.s32.totalorder %s146_s1, %s146_s1 }
  0x2a   :  { %v65_v8 = vmul.f32 0.25, %v63_v5  ;;  %v67_v9 = vmin.f32 %v63_v5, 0.0 }
  0x2b   :  { %v68_v10 = vsub.f32 %v64_v6, %v66_v7  ;;  %p153_p5 = por %p152_p4, %p151_p3 }
  0x2c   :  { %v69_v11 = vsub.f32 %v65_v8, %v67_v9 }
  0x2d   :  { %76 = vst [vmem:[#allocation7] sm:$0xff] %v68_v10  ;;  %p154_p6 = pnand %p153_p5, %p147_p2 }
  0x2e   :  { %77 = vst [vmem:[#allocation7 + $0x8] sm:$0xff] %v69_v11 }
  0x2f   :  { %157 = shalt.err (!%p154_p6)
}
  0x30   :  { %s158_s10 = scalar_lea.hbm %s241_s2, 256 }
  0x31   :  { %p159_p7 = scmp.ne.s32.totalorder %s241_s2, %s158_s10  ;;  %p162_p8 = scmp.lt.u32.totalorder %s158_s10, %s241_s2 }
  0x33   :  { %p164_p9 = pnand %p162_p8, %p159_p7 }
  0x35   :  { %167 = shalt.err (!%p164_p9)
}
  0x36   :  { %89 = dma.vmem_to_hbm [thread:$0]  %s84_s7, 256, %s241_s2, [#allocation4], %s175_s19, %s175_s19, %s176_s20  }
  0x37   :  { %172 = dma.done.wait [#allocation4], 256  }
  0x38   :  { %173 = vsyncadd [#allocation4], 4294967040 }
  0x39   :  { %93 = vsyncpa [#allocation3], 1 }
  0x3a   :  { %94 = vsyncpa [#allocation6], 1 }
  0x3b   :  { %95 = vsyncpa [#allocation4], 1 }

</bundles_post_ra>
